<compile_context>
chip_gen: v5e
topology: v5e:2x2
jax: 0.10.0
libtpu: 0.0.40
codegen_flags: <defaults>
</compile_context>

<pallas_src>
import jax
import jax.numpy as jnp
from jax.experimental import pallas as pl
from jax.experimental.pallas import tpu as pltpu

_MIB = 1024 * 1024


# ---------------------------------------------------------------------------
# Kernels
# ---------------------------------------------------------------------------
def _kslab_kernel(x_ref, w_ref, bs_ref, o_ref):
    # Path A: full-K slabs resident in VMEM, no reduction grid axis.
    # x_ref: (tm, K) bf16, w_ref: (K, tn) bf16, bs_ref: (2, tn) f32.
    acc = jnp.dot(x_ref[...], w_ref[...], preferred_element_type=jnp.float32)
    bs = bs_ref[...]                       # row 0 = bias, row 1 = scale
    o_ref[...] = (acc + bs[0:1, :]) * bs[1:2, :]


def _ktiled_kernel(x_ref, w_ref, bs_ref, o_ref):
    # Path B: grid = (M//tm, N//tn, K//tk); K last ("arbitrary").
    # o_ref (f32) is the accumulator: its block index (i, j) is constant in k.
    k = pl.program_id(2)
    prod = jnp.dot(x_ref[...], w_ref[...], preferred_element_type=jnp.float32)

    @pl.when(k == 0)
    def _():
        o_ref[...] = prod                  # first step: write, no zero-init pass

    @pl.when(k > 0)
    def _():
        o_ref[...] += prod

    @pl.when(k == pl.num_programs(2) - 1)
    def _():
        bs = bs_ref[...]                   # (2, tn)
        o_ref[...] = (o_ref[...] + bs[0:1, :]) * bs[1:2, :]


# ---------------------------------------------------------------------------
# Planning helpers (pure Python, trace time)
# ---------------------------------------------------------------------------
def _round_up(a, b):
    return (a + b - 1) // b * b


def _vmem_capacity_bytes():
    try:
        cap = int(pltpu.get_tpu_info().vmem_capacity_bytes)
        if cap > 0:
            return cap
    except Exception:
        pass
    return 64 * _MIB          # conservative: v7x per-TensorCore VMEM


def _tile_candidates(dim, allowed, full_upto):
    cands = [c for c in allowed if c <= dim]
    if dim <= full_upto:
        cands.append(dim)     # full extent: always a legal block size
    if not cands:
        cands = [dim]
    # Prefer exact divisors (no padding waste), then larger tiles.
    return sorted(set(cands), key=lambda c: (dim % c != 0, -c))


def _plan_tiles(M, N, K, budget):
    """Pick (path, tm, tn, tk) so the double-buffered footprint fits `budget`."""

    def footprint(tm, tn, tk):
        # 2x everything: BlockSpec double-buffers each operand and the output.
        return 2 * (tm * tk * 2 + tk * tn * 2 + tm * tn * 4 + 2 * tn * 4)

    def pick(tm_cands, tn_cands, tk_cands):
        for tm in tm_cands:
            gi = _round_up(M, tm) // tm
            tns = tn_cands
            if gi == 1:
                # Megacore (v7x): avoid collapsing to a 1x1 parallel grid; keep
                # tn >= 256 so the 256-wide MXU stays filled.
                def mc_key(tn):
                    gj = _round_up(N, tn) // tn
                    return 0 if (gj >= 2 and tn >= 256) else 1
                tns = sorted(tn_cands, key=mc_key)
            for tn in tns:
                for tk in tk_cands:
                    if footprint(tm, tn, tk) <= budget:
                        return tm, tn, tk
        return None

    # Path A: full-K slabs, 2-D (M, N) grid.  Intensity ~ tm flop/byte.
    plan_a = pick(_tile_candidates(M, (1024, 512, 256, 128), 1024),
                  _tile_candidates(N, (512, 256, 128), 512),
                  [K])
    # Path B: K-reduction grid with big output tiles.
    # Intensity ~ tm*tn/(tm+tn) flop/byte per step.
    plan_b = pick(_tile_candidates(M, (2048, 1024, 512, 256, 128), 2048),
                  _tile_candidates(N, (1024, 512, 256, 128), 1024),
                  _tile_candidates(K, (2048, 1024, 512, 256, 128), 0))

    score_a = plan_a[0] if plan_a is not None else -1.0
    score_b = (plan_b[0] * plan_b[1] / (plan_b[0] + plan_b[1])
               if plan_b is not None else -1.0)

    if plan_a is not None and (plan_b is None or 1.25 * score_a >= score_b):
        return ("A",) + plan_a
    if plan_b is not None:
        return ("B",) + plan_b
    # Last resort: minimal legal tiles (fits any realistic budget).
    return ("B", min(128, M), min(128, N), min(128, K))


# ---------------------------------------------------------------------------
# Public entry point
# ---------------------------------------------------------------------------
@jax.jit
def linear_scaled(x, weight, bias, scale):
    """LinearScaled forward: y = (x @ weight.T + bias) * scale.

    x:      (M, K) float32
    weight: (N, K) float32 (torch nn.Linear layout)
    bias:   (N,)   float32
    scale:  (N,)   float32
    returns (M, N) float32
    """
    M, K = x.shape
    N, K2 = weight.shape
    assert K == K2 and bias.shape == (N,) and scale.shape == (N,)

    cap = _vmem_capacity_bytes()
    budget = min(cap // 2, 48 * _MIB)                    # tile double-buffer budget
    vmem_limit = min(cap * 3 // 4, budget + 32 * _MIB)   # scoped VMEM for Mosaic

    path, tm, tn, tk = _plan_tiles(M, N, K, budget)

    Mp = _round_up(M, tm)
    Np = _round_up(N, tn)
    Kp = _round_up(K, tk) if path == "B" else K

    # bf16 operands for the MXU + halved HBM traffic; f32 accumulate/epilogue.
    # TODO(synk): make the bf16 cast opt-in if strict f32 GEMM precision is required.
    x_bf = x.astype(jnp.bfloat16)
    w_bf = weight.T.astype(jnp.bfloat16)                 # (K, N): one-time upstream transpose
    bs = jnp.stack([bias, scale], axis=0).astype(jnp.float32)   # (2, N)

    # Zero-pad ragged dims to the tile quantum (safe for a matmul); slice after.
    if Mp != M or Kp != K:
        x_bf = jnp.pad(x_bf, ((0, Mp - M), (0, Kp - K)))
    if Kp != K or Np != N:
        w_bf = jnp.pad(w_bf, ((0, Kp - K), (0, Np - N)))
    if Np != N:
        bs = jnp.pad(bs, ((0, 0), (0, Np - N)))

    out_shape = jax.ShapeDtypeStruct((Mp, Np), jnp.float32)
    cost = pl.CostEstimate(
        flops=2 * M * N * K,
        transcendentals=0,
        bytes_accessed=M * K * 2 + N * K * 2 + M * N * 4 + 2 * N * 4,
    )

    if path == "A":
        grid = (Mp // tm, Np // tn)
        out = pl.pallas_call(
            _kslab_kernel,
            out_shape=out_shape,
            grid_spec=pltpu.PrefetchScalarGridSpec(
                num_scalar_prefetch=0,
                grid=grid,
                in_specs=[
                    pl.BlockSpec((tm, Kp), lambda i, j: (i, 0)),   # x K-slab (re-DMA elided over j)
                    pl.BlockSpec((Kp, tn), lambda i, j: (0, j)),   # W K-slab (streams over j)
                    pl.BlockSpec((2, tn), lambda i, j: (0, j)),    # [bias; scale] columns
                ],
                out_specs=pl.BlockSpec((tm, tn), lambda i, j: (i, j)),
            ),
            compiler_params=pltpu.CompilerParams(
                dimension_semantics=("parallel", "parallel"),
                vmem_limit_bytes=vmem_limit,
            ),
            cost_estimate=cost,
        )(x_bf, w_bf, bs)
    else:
        grid = (Mp // tm, Np // tn, Kp // tk)
        out = pl.pallas_call(
            _ktiled_kernel,
            out_shape=out_shape,
            grid_spec=pltpu.PrefetchScalarGridSpec(
                num_scalar_prefetch=0,
                grid=grid,
                in_specs=[
                    pl.BlockSpec((tm, tk), lambda i, j, k: (i, k)),
                    pl.BlockSpec((tk, tn), lambda i, j, k: (k, j)),
                    pl.BlockSpec((2, tn), lambda i, j, k: (0, j)),
                ],
                out_specs=pl.BlockSpec((tm, tn), lambda i, j, k: (i, j)),
                # No scratch: the f32 output tile is the accumulator.
            ),
            compiler_params=pltpu.CompilerParams(
                dimension_semantics=("parallel", "parallel", "arbitrary"),
                vmem_limit_bytes=vmem_limit,
            ),
            cost_estimate=cost,
        )(x_bf, w_bf, bs)

    if Mp != M or Np != N:
        out = out[:M, :N]
    return out


# ---------------------------------------------------------------------------
# Parameter init matching LinearScaled.__init__ default (oblique) branch
# ---------------------------------------------------------------------------
def init_linear_scaled_params(key, in_features, out_features):
    """W ~ N(0,1) row-normalized to unit norm; bias = 0; scale = 1."""
    w = jax.random.normal(key, (out_features, in_features), dtype=jnp.float32)
    w = w / jnp.linalg.norm(w, axis=1, keepdims=True)
    b = jnp.zeros((out_features,), dtype=jnp.float32)
    s = jnp.ones((out_features,), dtype=jnp.float32)
    return w, b, s


def _reference(x, w, b, s):
    return (x @ w.T + b) * s


if __name__ == "__main__":
    key = jax.random.PRNGKey(0)
    kx, kw, kb, ks, kx2, kw2, kx3, kw3 = jax.random.split(key, 8)

    # Small shapes consistent with the module: batch=8, in=32, out=64.
    M, K, N = 8, 32, 64
    x = jax.random.normal(kx, (M, K), dtype=jnp.float32)
    w, _, _ = init_linear_scaled_params(kw, K, N)
    b = 0.1 * jax.random.normal(kb, (N,), dtype=jnp.float32)          # non-trivial bias
    s = 1.0 + 0.1 * jax.random.normal(ks, (N,), dtype=jnp.float32)    # non-trivial scale

    out = jax.block_until_ready(linear_scaled(x, w, b, s))
    ref = _reference(x, w, b, s)
    assert out.shape == (M, N) and out.dtype == jnp.float32
    assert jnp.allclose(out, ref, atol=5e-2, rtol=5e-2), float(jnp.abs(out - ref).max())

    # Exercise the K-resident path with a >1 parallel grid and padding (N=384).
    M2, K2, N2 = 256, 1024, 384
    x2 = jax.random.normal(kx2, (M2, K2), dtype=jnp.float32)
    w2, b2, s2 = init_linear_scaled_params(kw2, K2, N2)
    out2 = jax.block_until_ready(linear_scaled(x2, w2, b2, s2))
    ref2 = _reference(x2, w2, b2, s2)
    assert jnp.allclose(out2, ref2, atol=5e-2, rtol=5e-2), float(jnp.abs(out2 - ref2).max())

    # Exercise the main large-GEMM path (K stays VMEM-resident, W streams).
    M3, K3, N3 = 512, 4096, 512
    x3 = jax.random.normal(kx3, (M3, K3), dtype=jnp.float32)
    w3, b3, s3 = init_linear_scaled_params(kw3, K3, N3)
    out3 = jax.block_until_ready(linear_scaled(x3, w3, b3, s3))
    ref3 = _reference(x3, w3, b3, s3)
    assert jnp.allclose(out3, ref3, atol=5e-2, rtol=5e-2), float(jnp.abs(out3 - ref3).max())

    print("KERNEL_OK")
</pallas_src>

<mosaic_0001>
module attributes {stable_mosaic.version = 11 : i64} {
  func.func @_kslab_kernel(%arg0: i32, %arg1: i32, %arg2: memref<8x32xbf16, #tpu.memory_space<vmem>>, %arg3: memref<32x64xbf16, #tpu.memory_space<vmem>>, %arg4: memref<2x64xf32, #tpu.memory_space<vmem>>, %arg5: memref<8x64xf32, #tpu.memory_space<vmem>>) attributes {dimension_semantics = [#tpu.dimension_semantics<parallel>, #tpu.dimension_semantics<parallel>], iteration_bounds = array<i64: 1, 1>, scalar_prefetch = 0 : i64, scratch_operands = 0 : i64, tpu.core_type = #tpu.core_type<tc>, window_params = [{transform_indices = @transform_0, window_bounds = array<i64: 8, 32>}, {transform_indices = @transform_1, window_bounds = array<i64: 32, 64>}, {transform_indices = @transform_2, window_bounds = array<i64: 2, 64>}, {transform_indices = @transform_3, window_bounds = array<i64: 8, 64>}]} {
    %c0 = arith.constant 0 : index
    %c0_0 = arith.constant 0 : index
    %0 = vector.load %arg2[%c0, %c0_0] : memref<8x32xbf16, #tpu.memory_space<vmem>>, vector<8x32xbf16>
    %c0_1 = arith.constant 0 : index
    %c0_2 = arith.constant 0 : index
    %1 = vector.load %arg3[%c0_1, %c0_2] : memref<32x64xbf16, #tpu.memory_space<vmem>>, vector<32x64xbf16>
    %cst = arith.constant dense<0.000000e+00> : vector<8x64xf32>
    %2 = tpu.matmul %0, %1, %cst {dimension_numbers = #tpu.dot_dimension_numbers<[1], [0], [0], [1], [0, 0, 1, 1], [], []>} : vector<8x32xbf16>, vector<32x64xbf16>, vector<8x64xf32> -> vector<8x64xf32>
    %c0_3 = arith.constant 0 : index
    %c0_4 = arith.constant 0 : index
    %3 = vector.load %arg4[%c0_3, %c0_4] : memref<2x64xf32, #tpu.memory_space<vmem>>, vector<2x64xf32>
    %4 = vector.extract_strided_slice %3 {offsets = [0, 0], sizes = [1, 64], strides = [1, 1]} : vector<2x64xf32> to vector<1x64xf32>
    %5 = vector.broadcast %4 : vector<1x64xf32> to vector<8x64xf32>
    %6 = arith.addf %2, %5 : vector<8x64xf32>
    %7 = vector.extract_strided_slice %3 {offsets = [1, 0], sizes = [1, 64], strides = [1, 1]} : vector<2x64xf32> to vector<1x64xf32>
    %8 = vector.broadcast %7 : vector<1x64xf32> to vector<8x64xf32>
    %9 = arith.mulf %6, %8 : vector<8x64xf32>
    %c0_5 = arith.constant 0 : index
    %c0_6 = arith.constant 0 : index
    %10 = vector.load %arg5[%c0_5, %c0_6] : memref<8x64xf32, #tpu.memory_space<vmem>>, vector<8x64xf32>
    tpu.vector_store %arg5[%c0_5, %c0_6], %9 {strides = array<i32>} : memref<8x64xf32, #tpu.memory_space<vmem>>, vector<8x64xf32>,
    return
  }
  func.func @transform_0(%arg0: i32, %arg1: i32) -> (i32, i32) {
    %c0_i32 = arith.constant 0 : i32
    %c0_i32_0 = arith.constant 0 : i32
    return %arg0, %c0_i32 : i32, i32
  }
  func.func @transform_1(%arg0: i32, %arg1: i32) -> (i32, i32) {
    %c0_i32 = arith.constant 0 : i32
    %c0_i32_0 = arith.constant 0 : i32
    return %c0_i32, %arg1 : i32, i32
  }
  func.func @transform_2(%arg0: i32, %arg1: i32) -> (i32, i32) {
    %c0_i32 = arith.constant 0 : i32
    %c0_i32_0 = arith.constant 0 : i32
    return %c0_i32, %arg1 : i32, i32
  }
  func.func @transform_3(%arg0: i32, %arg1: i32) -> (i32, i32) {
    %c0_i32 = arith.constant 0 : i32
    return %arg0, %arg1 : i32, i32
  }
}

</mosaic_0001>

<bundles_post_ra>
// kernel: linear_scaled.1
= control target key start
LH: loop header
LB: loop body
LE: loop exit
PB: predicated region body
PF: predicated region fallthrough
CT: control target
= control target key end

     0   :  { %s146_s0 = inlined_call_operand.vmem [shape: bf16[8,32], index: 0, kind: input, shape index: {}]   ;;  %s147_s1 = inlined_call_operand.vmem [shape: bf16[32,64], index: 1, kind: input, shape index: {}]   ;;  %s148_s2 = inlined_call_operand.vmem [shape: f32[2,64], index: 2, kind: input, shape index: {}]   ;;  %s149_s3 = inlined_call_operand.hbm [shape: f32[8,64], index: 3, kind: output, shape index: {}]  }
   0x1   :  { %v82_v0 = vld [vmem:[%s147_s1 + $0x8] sm:$0xff] }
   0x2   :  { %8 = vsyncpa [#allocation3], 0  ;;  %45 = vmatpush.bf16.msra.mxu0 %v82_v0  ;;  %v81_v1 = vld [vmem:[%s147_s1] sm:$0xff]  ;;  %vm35_vm0 = vcmask 261120   ;;  %s110_s20 = smov [#allocation2]   ;;  %s63_s1 = sshll.u32 %s149_s3, 4  ;;  %s64_s1 = int_to_ptr.hbm [resolvable:$true] %s63_s1 }
   0x3   :  { %v16_v2 = vld [vmem:[%s146_s0] sm:$0xf]  ;;  %s61_s21 = sshll.u32 %s110_s20, 4  ;;  %vm54_vm1 = vcmask 523264   ;;  %s62_s21 = int_to_ptr.vmem [resolvable:$true] %s61_s21 }
   0x4   :  { %v21_v3 = vld [vmem:[%s148_s2] sm:$0x3] }
   0x5   :  { %v22_v4 = vperm.slane %v21_v3, 0  ;;  %v52_v5 = vperm.slane %v21_v3, 1 }
   0x6   :  { %46 = vmatpush.bf16.msra.mxu0 %v81_v1 }
   0x9   :  { %80 = vmatmul.msk.bf16.vlgmr.msra.gmra.mxu0 %vm35_vm0, %v16_v2 }
  0x86   :  { %v48_v6 = vpop.f32.mrf.mxu0 }
  0x87   :  { %v49_v7 = vadd.f32 %v48_v6, %v22_v4 }
  0x89   :  { %v53_v8 = vmul.f32 %v52_v5, %v49_v7 }
  0x8b   :  { %55 = vst.msk [vmem:[#allocation2] sm:$0xff] %vm54_vm1, %v53_v8 }
  0x8c   :  { %66 = dma.vmem_to_hbm [thread:$0]  %s62_s21, 128, %s64_s1, [#allocation3]  }
  0x8e   :  { %v50_v9 = vpop.f32.mrf.mxu0 }
  0x8f   :  { %108 = dma.done.wait [#allocation3], 128  }
  0x90   :  { %109 = vsyncadd [#allocation3], 4294967168 }
  0x91   :  { %71 = vsyncpa [#allocation3], 1 }

</bundles_post_ra>
